<compile_context>
chip_gen: v7x
topology: tpu7x:2x2x1
jax: 0.10.0
libtpu: 0.0.40
codegen_flags: <defaults>
</compile_context>

<pallas_src>
import jax
import jax.numpy as jnp
from jax.experimental import pallas as pl
from jax.experimental.pallas import tpu as pltpu


def _round_up(x, m):
    return ((x + m - 1) // m) * m


def _supports_bf16_vpu():
    """bf16 VALU exists on v6e/v7x; v5e and older are f32-only on the VPU."""
    try:
        kind = jax.devices()[0].device_kind.lower()
    except Exception:
        return False
    return not any(tag in kind for tag in ("v2", "v3", "v4", "v5"))


def _choose_row_tile(M, tm):
    """Row tile: large (amortize grid-step overhead) but always >=2 grid steps
    when M allows, so the parallel row axis can shard across v7x's 2 TCs."""
    Mp8 = _round_up(max(M, 1), 8)
    if Mp8 <= 16:
        return Mp8
    half = _round_up(-(-Mp8 // 2), 8)
    return max(8, min(tm, half))


def fold_classifier_head(params):
    """W01 = Wp @ W1, b01 = bp @ W1 + b1, computed in f32 (exact fold)."""
    wp = params["wp"].astype(jnp.float32)
    w1 = params["w1"].astype(jnp.float32)
    w01 = wp @ w1
    b01 = params["bp"].astype(jnp.float32) @ w1 + params["b1"].astype(jnp.float32)
    return w01, b01


# ----------------------------------------------------------------------------
# Fused kernel: (patch-embed∘Linear384->256) -> ReLU -> Linear256->128 -> ReLU
#               -> Linear128->vocab(+pad), all weights VMEM-resident.
# ----------------------------------------------------------------------------
def _make_fused_kernel(epi_dtype):
    def fused_htr_kernel(p_ref, w01_ref, b01_ref, w2_ref, b2_ref,
                         w3_ref, b3_ref, o_ref):
        # Folded patch-embed + Linear 384->256 (single 64-wide GEMM) + ReLU.
        h1 = jnp.dot(p_ref[...], w01_ref[...],
                     preferred_element_type=jnp.float32)
        h1 = jnp.maximum(h1.astype(epi_dtype) + b01_ref[...], 0)
        h1 = h1.astype(jnp.bfloat16)

        # Linear 256 -> 128 + ReLU.  (Dropout(0.1) is identity at inference.)
        h2 = jnp.dot(h1, w2_ref[...], preferred_element_type=jnp.float32)
        h2 = jnp.maximum(h2.astype(epi_dtype) + b2_ref[...], 0)
        h2 = h2.astype(jnp.bfloat16)

        # Linear 128 -> vocab (vocab padded to 128-multiple: lane-dense store).
        logits = jnp.dot(h2, w3_ref[...], preferred_element_type=jnp.float32)
        o_ref[...] = (logits.astype(epi_dtype) + b3_ref[...]).astype(o_ref.dtype)

    return fused_htr_kernel


def enhanced_htr_pallas(patches, params, *, tm=1024, out_dtype=jnp.bfloat16,
                        bf16_epilogue=None):
    """patches: (M, 64) bf16 raw 4x4 patches -> (M, vocab_size) logits."""
    if bf16_epilogue is None:
        bf16_epilogue = _supports_bf16_vpu()
    epi_dtype = jnp.bfloat16 if bf16_epilogue else jnp.float32

    M, P = patches.shape
    H1 = params["w1"].shape[1]              # 256
    H2 = params["w2"].shape[1]              # 128
    V = params["w3"].shape[1]               # vocab_size
    Vp = _round_up(V, 128)                  # lane-dense output width

    tm_eff = _choose_row_tile(M, tm)
    Mp = _round_up(M, tm_eff)

    # Folded first layer (f32 fold, bf16 MXU operands).
    w01_f32, b01_f32 = fold_classifier_head(params)
    w01 = w01_f32.astype(jnp.bfloat16)
    w2 = params["w2"].astype(jnp.bfloat16)
    w3 = jnp.pad(params["w3"], ((0, 0), (0, Vp - V))).astype(jnp.bfloat16)
    b01 = b01_f32.astype(epi_dtype)
    b2 = params["b2"].astype(epi_dtype)
    b3 = jnp.pad(params["b3"], ((0, 0), (0, Vp - V))).astype(epi_dtype)

    p_pad = patches.astype(jnp.bfloat16)
    if Mp != M:
        p_pad = jnp.pad(p_pad, ((0, Mp - M), (0, 0)))

    grid = (Mp // tm_eff,)
    out = pl.pallas_call(
        _make_fused_kernel(epi_dtype),
        out_shape=jax.ShapeDtypeStruct((Mp, Vp), out_dtype),
        grid_spec=pltpu.PrefetchScalarGridSpec(
            num_scalar_prefetch=0,
            grid=grid,
            in_specs=[
                pl.BlockSpec((tm_eff, P), lambda i: (i, 0)),   # patch tile
                pl.BlockSpec((P, H1),     lambda i: (0, 0)),   # W01 (resident)
                pl.BlockSpec((1, H1),     lambda i: (0, 0)),   # b01
                pl.BlockSpec((H1, H2),    lambda i: (0, 0)),   # W2 (resident)
                pl.BlockSpec((1, H2),     lambda i: (0, 0)),   # b2
                pl.BlockSpec((H2, Vp),    lambda i: (0, 0)),   # W3 (resident)
                pl.BlockSpec((1, Vp),     lambda i: (0, 0)),   # b3
            ],
            out_specs=pl.BlockSpec((tm_eff, Vp), lambda i: (i, 0)),
        ),
        compiler_params=pltpu.CompilerParams(
            dimension_semantics=("parallel",),
            vmem_limit_bytes=16 * 1024 * 1024,
        ),
    )(p_pad, w01, b01, w2, b2, w3, b3)
    return out[:M, :V]


# ----------------------------------------------------------------------------
# Plain-JAX glue: NCHW image -> flattened 4x4 patches (bf16 cast fused in).
# ----------------------------------------------------------------------------
def extract_patches(x, patch=4, dtype=jnp.bfloat16):
    B, C, H, W = x.shape
    ph, pw = H // patch, W // patch
    p = x.reshape(B, C, ph, patch, pw, patch)
    p = p.transpose(0, 2, 4, 1, 3, 5).reshape(B, ph * pw, C * patch * patch)
    return p.astype(dtype)                            # (B, S, C*patch*patch)


def enhanced_htr_forward(x, params, *, patch=4, tm=1024,
                         out_dtype=jnp.bfloat16, bf16_epilogue=None):
    p = extract_patches(x, patch)                     # (B, S, 64) bf16
    B, S, P = p.shape
    logits_2d = enhanced_htr_pallas(p.reshape(B * S, P), params, tm=tm,
                                    out_dtype=out_dtype,
                                    bf16_epilogue=bf16_epilogue)
    return logits_2d.reshape(B, S, -1)


# ----------------------------------------------------------------------------
# Reference (plain JAX, folded first layer, mirrored bf16 MXU operand casts).
# ----------------------------------------------------------------------------
def reference_forward(x, params, patch=4):
    p = extract_patches(x, patch)
    B, S, P = p.shape
    w01_f32, b01_f32 = fold_classifier_head(params)
    p2 = p.reshape(B * S, P)
    h1 = jnp.maximum(
        jnp.dot(p2, w01_f32.astype(jnp.bfloat16),
                preferred_element_type=jnp.float32) + b01_f32, 0.0)
    h2 = jnp.maximum(
        jnp.dot(h1.astype(jnp.bfloat16), params["w2"].astype(jnp.bfloat16),
                preferred_element_type=jnp.float32) + params["b2"], 0.0)
    out = jnp.dot(h2.astype(jnp.bfloat16), params["w3"].astype(jnp.bfloat16),
                  preferred_element_type=jnp.float32) + params["b3"]
    return out.reshape(B, S, -1)


def init_params(key, in_patch_dim, vocab_size):
    ks = jax.random.split(key, 8)

    def lin(kw, fan_in, fan_out):
        bound = 1.0 / jnp.sqrt(fan_in)
        return jax.random.uniform(kw, (fan_in, fan_out), jnp.float32,
                                  -bound, bound)

    return {
        "wp": lin(ks[0], in_patch_dim, 384),
        "bp": jnp.zeros((1, 384), jnp.float32),
        "w1": lin(ks[1], 384, 256),
        "b1": jax.random.uniform(ks[2], (1, 256), jnp.float32, -0.05, 0.05),
        "w2": lin(ks[3], 256, 128),
        "b2": jax.random.uniform(ks[4], (1, 128), jnp.float32, -0.0625, 0.0625),
        "w3": lin(ks[5], 128, vocab_size),
        "b3": jax.random.uniform(ks[6], (1, vocab_size), jnp.float32,
                                 -0.088, 0.088),
    }


if __name__ == "__main__":
    key = jax.random.PRNGKey(0)
    k_x, k_p = jax.random.split(key)

    B, C, H, W = 2, 4, 16, 16           # small NCHW image input
    vocab_size = 128                    # already lane-dense (multiple of 128)
    patch = 4
    in_patch_dim = C * patch * patch    # 64

    x = jax.random.normal(k_x, (B, C, H, W), jnp.float32)
    params = init_params(k_p, in_patch_dim, vocab_size)

    logits = enhanced_htr_forward(x, params, patch=patch, tm=1024)
    logits = jax.block_until_ready(logits)

    ref = reference_forward(x, params, patch=patch)
    assert logits.shape == (B, (H // patch) * (W // patch), vocab_size)
    assert jnp.allclose(logits.astype(jnp.float32), ref,
                        atol=2e-2, rtol=2e-2), "mismatch vs ref"

    print("KERNEL_OK")
</pallas_src>

<mosaic_0001>
module attributes {stable_mosaic.version = 11 : i64} {
  func.func @fused_htr_kernel(%arg0: i32, %arg1: memref<16x64xbf16, #tpu.memory_space<vmem>>, %arg2: memref<64x256xbf16, #tpu.memory_space<vmem>>, %arg3: memref<1x256xbf16, #tpu.memory_space<vmem>>, %arg4: memref<256x128xbf16, #tpu.memory_space<vmem>>, %arg5: memref<1x128xbf16, #tpu.memory_space<vmem>>, %arg6: memref<128x128xbf16, #tpu.memory_space<vmem>>, %arg7: memref<1x128xbf16, #tpu.memory_space<vmem>>, %arg8: memref<16x128xbf16, #tpu.memory_space<vmem>>) attributes {dimension_semantics = [#tpu.dimension_semantics<parallel>], iteration_bounds = array<i64: 2>, scalar_prefetch = 0 : i64, scratch_operands = 0 : i64, tpu.core_type = #tpu.core_type<tc>, window_params = [{transform_indices = @transform_0, window_bounds = array<i64: 16, 64>}, {pipeline_mode = #tpu.pipeline_mode<synchronous>, transform_indices = @transform_1, window_bounds = array<i64: 64, 256>}, {pipeline_mode = #tpu.pipeline_mode<synchronous>, transform_indices = @transform_2, window_bounds = array<i64: 1, 256>}, {pipeline_mode = #tpu.pipeline_mode<synchronous>, transform_indices = @transform_3, window_bounds = array<i64: 256, 128>}, {pipeline_mode = #tpu.pipeline_mode<synchronous>, transform_indices = @transform_4, window_bounds = array<i64: 1, 128>}, {pipeline_mode = #tpu.pipeline_mode<synchronous>, transform_indices = @transform_5, window_bounds = array<i64: 128, 128>}, {pipeline_mode = #tpu.pipeline_mode<synchronous>, transform_indices = @transform_6, window_bounds = array<i64: 1, 128>}, {transform_indices = @transform_7, window_bounds = array<i64: 16, 128>}]} {
    %c0 = arith.constant 0 : index
    %c0_0 = arith.constant 0 : index
    %0 = vector.load %arg1[%c0, %c0_0] : memref<16x64xbf16, #tpu.memory_space<vmem>>, vector<16x64xbf16>
    %c0_1 = arith.constant 0 : index
    %c0_2 = arith.constant 0 : index
    %1 = vector.load %arg2[%c0_1, %c0_2] : memref<64x256xbf16, #tpu.memory_space<vmem>>, vector<64x256xbf16>
    %cst = arith.constant dense<0.000000e+00> : vector<16x256xf32>
    %2 = tpu.matmul %0, %1, %cst {dimension_numbers = #tpu.dot_dimension_numbers<[1], [0], [0], [1], [0, 0, 1, 1], [], []>} : vector<16x64xbf16>, vector<64x256xbf16>, vector<16x256xf32> -> vector<16x256xf32>
    %3 = arith.truncf %2 : vector<16x256xf32> to vector<16x256xbf16>
    %c0_3 = arith.constant 0 : index
    %c0_4 = arith.constant 0 : index
    %4 = vector.load %arg3[%c0_3, %c0_4] : memref<1x256xbf16, #tpu.memory_space<vmem>>, vector<1x256xbf16>
    %5 = vector.broadcast %4 : vector<1x256xbf16> to vector<16x256xbf16>
    %6 = arith.addf %3, %5 : vector<16x256xbf16>
    %cst_5 = arith.constant 0.000000e+00 : bf16
    %7 = vector.broadcast %cst_5 : bf16 to vector<16x256xbf16>
    %8 = arith.maximumf %6, %7 : vector<16x256xbf16>
    %c0_6 = arith.constant 0 : index
    %c0_7 = arith.constant 0 : index
    %9 = vector.load %arg4[%c0_6, %c0_7] : memref<256x128xbf16, #tpu.memory_space<vmem>>, vector<256x128xbf16>
    %cst_8 = arith.constant dense<0.000000e+00> : vector<16x128xf32>
    %10 = tpu.matmul %8, %9, %cst_8 {dimension_numbers = #tpu.dot_dimension_numbers<[1], [0], [0], [1], [0, 0, 1, 1], [], []>} : vector<16x256xbf16>, vector<256x128xbf16>, vector<16x128xf32> -> vector<16x128xf32>
    %11 = arith.truncf %10 : vector<16x128xf32> to vector<16x128xbf16>
    %c0_9 = arith.constant 0 : index
    %c0_10 = arith.constant 0 : index
    %12 = vector.load %arg5[%c0_9, %c0_10] : memref<1x128xbf16, #tpu.memory_space<vmem>>, vector<1x128xbf16>
    %13 = vector.broadcast %12 : vector<1x128xbf16> to vector<16x128xbf16>
    %14 = arith.addf %11, %13 : vector<16x128xbf16>
    %cst_11 = arith.constant 0.000000e+00 : bf16
    %15 = vector.broadcast %cst_11 : bf16 to vector<16x128xbf16>
    %16 = arith.maximumf %14, %15 : vector<16x128xbf16>
    %c0_12 = arith.constant 0 : index
    %c0_13 = arith.constant 0 : index
    %17 = vector.load %arg6[%c0_12, %c0_13] : memref<128x128xbf16, #tpu.memory_space<vmem>>, vector<128x128xbf16>
    %cst_14 = arith.constant dense<0.000000e+00> : vector<16x128xf32>
    %18 = tpu.matmul %16, %17, %cst_14 {dimension_numbers = #tpu.dot_dimension_numbers<[1], [0], [0], [1], [0, 0, 1, 1], [], []>} : vector<16x128xbf16>, vector<128x128xbf16>, vector<16x128xf32> -> vector<16x128xf32>
    %19 = arith.truncf %18 : vector<16x128xf32> to vector<16x128xbf16>
    %c0_15 = arith.constant 0 : index
    %c0_16 = arith.constant 0 : index
    %20 = vector.load %arg7[%c0_15, %c0_16] : memref<1x128xbf16, #tpu.memory_space<vmem>>, vector<1x128xbf16>
    %21 = vector.broadcast %20 : vector<1x128xbf16> to vector<16x128xbf16>
    %22 = arith.addf %19, %21 : vector<16x128xbf16>
    %c0_17 = arith.constant 0 : index
    %c0_18 = arith.constant 0 : index
    %23 = vector.load %arg8[%c0_17, %c0_18] : memref<16x128xbf16, #tpu.memory_space<vmem>>, vector<16x128xbf16>
    tpu.vector_store %arg8[%c0_17, %c0_18], %22 {strides = array<i32>} : memref<16x128xbf16, #tpu.memory_space<vmem>>, vector<16x128xbf16>,
    return
  }
  func.func @transform_0(%arg0: i32) -> (i32, i32) {
    %c0_i32 = arith.constant 0 : i32
    %c0_i32_0 = arith.constant 0 : i32
    return %arg0, %c0_i32 : i32, i32
  }
  func.func @transform_1(%arg0: i32) -> (i32, i32) {
    %c0_i32 = arith.constant 0 : i32
    %c0_i32_0 = arith.constant 0 : i32
    %c0_i32_1 = arith.constant 0 : i32
    return %c0_i32, %c0_i32_0 : i32, i32
  }
  func.func @transform_2(%arg0: i32) -> (i32, i32) {
    %c0_i32 = arith.constant 0 : i32
    %c0_i32_0 = arith.constant 0 : i32
    %c0_i32_1 = arith.constant 0 : i32
    return %c0_i32, %c0_i32_0 : i32, i32
  }
  func.func @transform_3(%arg0: i32) -> (i32, i32) {
    %c0_i32 = arith.constant 0 : i32
    %c0_i32_0 = arith.constant 0 : i32
    %c0_i32_1 = arith.constant 0 : i32
    return %c0_i32, %c0_i32_0 : i32, i32
  }
  func.func @transform_4(%arg0: i32) -> (i32, i32) {
    %c0_i32 = arith.constant 0 : i32
    %c0_i32_0 = arith.constant 0 : i32
    %c0_i32_1 = arith.constant 0 : i32
    return %c0_i32, %c0_i32_0 : i32, i32
  }
  func.func @transform_5(%arg0: i32) -> (i32, i32) {
    %c0_i32 = arith.constant 0 : i32
    %c0_i32_0 = arith.constant 0 : i32
    %c0_i32_1 = arith.constant 0 : i32
    return %c0_i32, %c0_i32_0 : i32, i32
  }
  func.func @transform_6(%arg0: i32) -> (i32, i32) {
    %c0_i32 = arith.constant 0 : i32
    %c0_i32_0 = arith.constant 0 : i32
    %c0_i32_1 = arith.constant 0 : i32
    return %c0_i32, %c0_i32_0 : i32, i32
  }
  func.func @transform_7(%arg0: i32) -> (i32, i32) {
    %c0_i32 = arith.constant 0 : i32
    %c0_i32_0 = arith.constant 0 : i32
    return %arg0, %c0_i32 : i32, i32
  }
}

</mosaic_0001>

<bundles_post_ra>
// kernel: tpu_custom_call.1
= control target key start
LH: loop header
LB: loop body
LE: loop exit
PB: predicated region body
PF: predicated region fallthrough
CT: control target
= control target key end

     0   :  { %s1674_s0 = inlined_call_operand.hbm [shape: bf16[32,64], index: 0, kind: input, shape index: {}]   ;;  %s1675_s1 = inlined_call_operand.hbm [shape: bf16[64,256], index: 1, kind: input, shape index: {}]   ;;  %s1676_s2 = inlined_call_operand.vmem [shape: bf16[1,256], index: 2, kind: input, shape index: {}]   ;;  %s1677_s3 = inlined_call_operand.hbm [shape: bf16[256,128], index: 3, kind: input, shape index: {}]   ;;  %s1678_s4 = inlined_call_operand.vmem [shape: bf16[1,128], index: 4, kind: input, shape index: {}]   ;;  %s1679_s5 = inlined_call_operand.hbm [shape: bf16[128,128], index: 5, kind: input, shape index: {}]   ;;  %s1680_s6 = inlined_call_operand.vmem [shape: bf16[1,128], index: 6, kind: input, shape index: {}]   ;;  %s1681_s7 = inlined_call_operand.hbm [shape: bf16[32,128], index: 7, kind: output, shape index: {}]  }
   0x1   :  { %1686 = sst [smem:[#allocation16_spill]] %s1675_s1 }
   0x2   :  { %12 = vsyncpa [#allocation3], 0 }
   0x3   :  { %14 = vsyncpa [#allocation3 + $0x1], 0 }
   0x4   :  { %15 = vsyncpa [#allocation6], 0 }
   0x5   :  { %16 = vsyncpa [#allocation9], 0 }
   0x6   :  { %17 = vsyncpa [#allocation4], 0 }
   0x7   :  { %19 = vsyncpa [#allocation4 + $0x1], 0  ;;  %s1389_s24 = smov 0   ;;  %s1391_s25 = smov 0  }
   0x8   :  { %s1393_s26 = smov 0   ;;  %s1395_s27 = smov 0  }
   0x9 LB: > { %s1410_s28 = sadd.s32 4294967295, %s1332_s27   ;;  %s910_s29 = sadd.s32 4294967294, %s1332_s27   ;;  %s1332_s27 = sphi %s1395_s27, %s1709_s27   ;;  %s1328_s26 = sphi %s1393_s26, %s1708_s26   ;;  %s1324_s25 = sphi %s1391_s25, %s1707_s25   ;;  %s1320_s24 = sphi %s1389_s24, %s1706_s24  }
   0xa   : > { %p45_p0 = scmp.ne.s32.totalorder %s1324_s25, %s1320_s24  ;;  %p1682_p1 = scmp.eq.s32.totalorder %s1410_s28, 0 }
   0xb   : > { %p201_p3 = scmp.eq.s32.totalorder %s910_s29, 1  ;;  %p911_p5 = scmp.ge.s32.totalorder %s1332_s27, 1 }
   0xc   : > { %p1419_p4 = por %p1682_p1, %p45_p0  ;;  %p208_p7 = scmp.lt.s32.totalorder %s1332_s27, 3 }
   0xd   : > { %p1424_p6 = por %p201_p3, %p45_p0  ;;  %s1334_s10 = smov [#allocation5]  }
   0xe   : > { %s1687_s30 = scalar_select %p1419_p4, 1, 0 }
   0xf   : > { %s1688_s8 = scalar_select %p1424_p6, 1, 0 }
  0x10   : > { %p1429_p8 = pnand %p911_p5, %p208_p7  ;;  %s220_s11 = sshll.u32 %s1334_s10, 4  ;;  %s1433_s11 = int_to_ptr.vmem [resolvable:$true] %s220_s11 }
  0x11   : > { %1689 = sst [smem:[#allocation15_spill]] %s1688_s8  ;;  %s1335_s13 = smov [#allocation7]  }
  0x12   : > { %s1690_s9 = scalar_select %p1429_p8, 1, 0 }
  0x13   : > { %p1036_p9 = pneg %p1429_p8  ;;  %s236_s14 = sshll.u32 %s1335_s13, 4  ;;  %s1444_s14 = int_to_ptr.vmem [resolvable:$true] %s236_s14 }
  0x14   : > { %s1692_s1 = sld [smem:[#allocation16_spill]] }
  0x15   : > { %p1440_p11 = pnand %p1036_p9, %p1682_p1 }
  0x17   : > { %p1454_p13 = pneg %p1440_p11 }
  0x1a   : > { %s1144_s17 = scalar_lea.hbm %s1692_s1, 1024 }
  0x1b   : > { %p1145_p12 = scmp.ne.s32.totalorder %s1692_s1, %s1144_s17  ;;  %p1151_p5 = scmp.lt.u32.totalorder %s1144_s17, %s1692_s1 }
  0x1d   : > { %p1147_p0 = pnand %p1454_p13, %p1145_p12 }
  0x1f   : > { %p1148_p3 = pneg %p1147_p0 }
  0x21   : > { %p1153_p7 = pnand %p1151_p5, %p1148_p3 }
  0x23   : > { %1156 = shalt.err (!%p1153_p7)
}
  0x24   : > { %s1157_s23 = scalar_lea.vmem %s1433_s11, 1024  ;;  %p1165_p2 = scmp.lt.s32.totalorder %s1433_s11, %s1433_s11 }
  0x25   : > { %p1158_p9 = scmp.ne.s32.totalorder %s1433_s11, %s1157_s23  ;;  %p1166_p6 = scmp.lt.s32.totalorder %s1157_s23, %s1157_s23 }
  0x27   : > { %p1160_p10 = pnand %p1158_p9, %p1454_p13  ;;  %p1167_p12 = por %p1166_p6, %p1165_p2 }
  0x29   : > { %p1161_p1 = pneg %p1160_p10 }
  0x2b   : > { %p1168_p0 = pnand %p1167_p12, %p1161_p1 }
  0x2d   : > { %1171 = shalt.err (!%p1168_p0)
}
  0x2e   : > { %s1336_s29 = smov 128   ;;  %s1337_s10 = smov 8  }
  0x2f   : > { %1039 = dma.hbm_to_vmem [thread:$0]  (!%p1440_p11), %s1692_s1, 1024, %s1433_s11, [#allocation6], %s1336_s29, %s1336_s29, %s1337_s10  }
  0x30   : > { %s1172_s18 = scalar_lea.hbm %s1677_s3, 2048 }
  0x31   : > { %p1173_p2 = scmp.ne.s32.totalorder %s1677_s3, %s1172_s18  ;;  %p1179_p10 = scmp.lt.u32.totalorder %s1172_s18, %s1677_s3 }
  0x33   : > { %p1175_p1 = pnand %p1173_p2, %p1454_p13 }
  0x35   : > { %p1176_p6 = pneg %p1175_p1 }
  0x37   : > { %p1181_p3 = pnand %p1179_p10, %p1176_p6 }
  0x39   : > { %1184 = shalt.err (!%p1181_p3)
}
  0x3a   : > { %s1185_s11 = scalar_lea.vmem %s1444_s14, 2048  ;;  %p1193_p12 = scmp.lt.s32.totalorder %s1444_s14, %s1444_s14 }
  0x3b   : > { %p1186_p5 = scmp.ne.s32.totalorder %s1444_s14, %s1185_s11  ;;  %p1194_p0 = scmp.lt.s32.totalorder %s1185_s11, %s1185_s11 }
  0x3d   : > { %p1188_p7 = pnand %p1186_p5, %p1454_p13  ;;  %p1195_p2 = por %p1194_p0, %p1193_p12 }
  0x3f   : > { %p1189_p9 = pneg %p1188_p7 }
  0x41   : > { %p1196_p1 = pnand %p1195_p2, %p1189_p9 }
  0x43   : > { %1199 = shalt.err (!%p1196_p1)
}
  0x44   : > { %s1338_s29 = smov 64   ;;  %s1339_s10 = smov 4  }
  0x45   : > { %1042 = dma.hbm_to_vmem [thread:$0]  (!%p1440_p11), %s1677_s3, 2048, %s1444_s14, [#allocation6], %s1338_s29, %s1338_s29, %s1339_s10  }
  0x46   : > { %s1340_s16 = smov [#allocation8]   ;;  %s1502_s18 = sadd.s32 1, %s1332_s27  }
  0x47   : > { %s252_s17 = sshll.u32 %s1340_s16, 4  ;;  %s1200_s22 = scalar_lea.hbm %s1679_s5, 1024  ;;  %s253_s17 = int_to_ptr.vmem [resolvable:$true] %s252_s17 }
  0x48   : > { %p1201_p6 = scmp.ne.s32.totalorder %s1679_s5, %s1200_s22  ;;  %p1207_p5 = scmp.lt.u32.totalorder %s1200_s22, %s1679_s5 }
  0x4a   : > { %p1203_p10 = pnand %p1201_p6, %p1454_p13 }
  0x4c   : > { %p1204_p3 = pneg %p1203_p10 }
  0x4e   : > { %p1209_p7 = pnand %p1207_p5, %p1204_p3 }
  0x50   : > { %1212 = shalt.err (!%p1209_p7)
}
  0x51   : > { %s1213_s14 = scalar_lea.vmem %s253_s17, 1024  ;;  %p1221_p2 = scmp.lt.s32.totalorder %s253_s17, %s253_s17 }
  0x52   : > { %p1214_p9 = scmp.ne.s32.totalorder %s253_s17, %s1213_s14  ;;  %p1222_p1 = scmp.lt.s32.totalorder %s1213_s14, %s1213_s14 }
  0x54   : > { %p1216_p12 = pnand %p1214_p9, %p1454_p13  ;;  %p1223_p4 = por %p1222_p1, %p1221_p2 }
  0x56   : > { %p1217_p0 = pneg %p1216_p12 }
  0x58   : > { %p1224_p8 = pnand %p1223_p4, %p1217_p0 }
  0x5a   : > { %1227 = shalt.err (!%p1224_p8)
}
  0x5b   : > { %1045 = dma.hbm_to_vmem [thread:$0]  (!%p1440_p11), %s1679_s5, 1024, %s253_s17, [#allocation9], %s1338_s29, %s1338_s29, %s1339_s10  }
  0x5c   : > { %s29_s20 = ssub.s32 %s1332_s27, %s1502_s18  ;;  %s32_s12 = sadd.s32 1, %s1328_s26 }
  0x5d   : > { %p30_p4 = scmp.eq.s32.totalorder %s29_s20, 0  ;;  %p39_p8 = scmp.ne.s32.totalorder %s1328_s26, %s1324_s25 }
  0x5e   : > { %p40_p13 = scmp.eq.s32.totalorder %s1332_s27, 0  ;;  %p1057_p6 = scmp.lt.s32.totalorder %s1332_s27, 2 }
  0x5f   : > { %s1533_s13 = scalar_select %p30_p4, %s1328_s26, %s32_s12  }
  0x60   : > { %p41_p10 = por %p40_p13, %p39_p8  ;;  %p1694_p3 = scmp.eq.s32.totalorder %s1410_s28, 1 }
  0x61   : > { %s269_s16 = sand.u32 1, %s1328_s26   ;;  %s967_s19 = sshll.u32 %s1332_s27, 7 }
  0x62   : > { %p1537_p5 = por %p1694_p3, %p39_p8  ;;  %s916_s21 = sshll.u32 %s269_s16, 3 }
  0x63   : > { %s1546_s17 = scalar_lea.hbm %s1674_s0, %s967_s19  ;;  %s273_s11 = scalar_lea.vmem [#allocation2], %s916_s21 }
  0x64   : > { %s280_s14 = sshll.u32 %s273_s11, 4  ;;  %p1548_p11 = pnand %p1057_p6, %p41_p10  ;;  %s1552_s14 = int_to_ptr.vmem [resolvable:$true] %s280_s14 }
  0x65   : > { %s1554_s8 = scalar_lea.sflag [#allocation3], %s269_s16  ;;  %s1228_s20 = scalar_lea.hbm %s1546_s17, 128 }
  0x66   : > { %p1229_p7 = scmp.ne.s32.totalorder %s1546_s17, %s1228_s20  ;;  %p1230_p9 = pneg %p1548_p11 }
  0x67   : > { %s1233_s21 = scalar_lea.hbm %s1674_s0, 256  ;;  %p1234_p2 = scmp.lt.u32.totalorder %s1546_s17, %s1674_s0 }
  0x68   : > { %p1231_p12 = pnand %p1230_p9, %p1229_p7  ;;  %p1235_p1 = scmp.lt.u32.totalorder %s1233_s21, %s1228_s20 }
  0x69   : > { %p1237_p8 = scmp.lt.u32.totalorder %s1228_s20, %s1546_s17 }
  0x6a   : > { %p1232_p0 = pneg %p1231_p12  ;;  %p1236_p4 = por %p1235_p1, %p1234_p2 }
  0x6c   : > { %p1238_p13 = por %p1237_p8, %p1236_p4 }
  0x6e   : > { %p1239_p6 = pnand %p1238_p13, %p1232_p0 }
  0x70   : > { %1242 = shalt.err (!%p1239_p6)
}
  0x71   : > { %s1243_s16 = scalar_lea.vmem %s1552_s14, 128  ;;  %s1341_s11 = smov [#allocation2]  }
  0x72   : > { %p1244_p10 = scmp.ne.s32.totalorder %s1552_s14, %s1243_s16  ;;  %s1248_s12 = sshll.u32 %s1341_s11, 4  ;;  %s1249_s12 = int_to_ptr.vmem [resolvable:$false] %s1248_s12 }
  0x73   : > { %s1250_s19 = scalar_lea.vmem %s1249_s12, 256  ;;  %p1251_p12 = scmp.lt.s32.totalorder %s1552_s14, %s1249_s12 }
  0x74   : > { %p1246_p3 = pnand %p1244_p10, %p1230_p9  ;;  %p1252_p2 = scmp.lt.s32.totalorder %s1250_s19, %s1243_s16 }
  0x76   : > { %p1247_p7 = pneg %p1246_p3  ;;  %p1253_p1 = por %p1252_p2, %p1251_p12 }
  0x78   : > { %p1254_p4 = pnand %p1253_p1, %p1247_p7 }
  0x7a   : > { %1257 = shalt.err (!%p1254_p4)
}
  0x7b   : > { %1049 = dma.hbm_to_vmem [thread:$0]  (!%p1548_p11), %s1546_s17, 128, %s1552_s14, %s1554_s8, %s1338_s29, %s1338_s29, %s1339_s10  }
  0x7c   : > { %p1697_p9 = scmp.ne.s32.totalorder %s1690_s9, 0 }
  0x7d   : > { %s1588_s20 = sand.u32 (!%p1697_p9), 1, %s1324_s25   ;;  %p1698_p0 = scmp.ne.s32.totalorder (!%p1697_p9), %s1687_s30, 0 }
  0x7e   : > { %292 = sbr.rel (%p1697_p9) target bundleno = 838 (0x346), region = 48  ;;  %s920_s21 = sshll.u32 (!%p1697_p9), %s1588_s20, 3 }
  0x7f   : > { %s295_s22 = scalar_lea.sflag (!%p1697_p9), [#allocation3], %s1588_s20  ;;  %s1594_s1 = scalar_lea.vmem (!%p1697_p9), [#allocation2], %s920_s21 }
  0x85   : > { %1303 = dma.done.wait (%p1698_p0), %s295_s22, 128  }
  0x86   : > { %1305 = vsyncadd (%p1698_p0), %s295_s22, 4294967168  ;;  %p1699_p11 = scmp.eq.s32.totalorder %s1410_s28, 0 }
  0x88   : > { %1307 = dma.done.wait (%p1699_p11), [#allocation6], 3072   ;;  %p1700_p8 = pmov %p1699_p11 }
  0x8a   : > { %1309 = vsyncadd (%p1700_p8), [#allocation6], 4294964224  ;;  %p1701_p13 = pmov %p1700_p8 }
  0x8b   : > { %p1702_p6 = pmov %p1700_p8 }
  0x8c   : > { %1311 = dma.done.wait (%p1701_p13), [#allocation9], 1024  }
  0x8d   : > { %1313 = vsyncadd (%p1702_p6), [#allocation9], 4294966272  ;;  %v1342_v0 = vmov 0   ;;  %v1107_v1 = vld [vmem:[#allocation5 + $0x4] ss:$8 sps:$4 sm:$0xff]   ;;  %v1124_v13 = vld [vmem:[#allocation7 + $0x50] sm:$0xff]   ;;  %v461_v34 = vlaneseq }
  0x8e   : > { %435 = vmatprep.mubr.bf16.mxu0 %v1342_v0  ;;  %v1109_v2 = vld [vmem:[#allocation5] ss:$8 sps:$4 sm:$0xff]   ;;  %403 = vmatprep.subr.bf16.mxu0 %v1107_v1  ;;  %v1110_v3 = vld [vmem:[#allocation5 + $0x14] ss:$8 sps:$4 sm:$0xff]   ;;  %v1112_v4 = vld [vmem:[#allocation5 + $0x10] ss:$8 sps:$4 sm:$0xff]  }
  0x8f   : > { %404 = vmatpush1.bf16.msra.mxu0 %v1109_v2  ;;  %v1113_v5 = vld [vmem:[#allocation5 + $0x24] ss:$8 sps:$4 sm:$0xff]   ;;  %v1115_v6 = vld [vmem:[#allocation5 + $0x20] ss:$8 sps:$4 sm:$0xff]   ;;  %v1116_v7 = vld [vmem:[#allocation5 + $0x34] ss:$8 sps:$4 sm:$0xff]  }
  0x90   : > { %405 = vmatprep.subr.bf16.mxu0 %v1110_v3  ;;  %v1120_v8 = vld [vmem:[#allocation7 + $0x40] sm:$0xff]   ;;  %v1118_v10 = vld [vmem:[#allocation5 + $0x30] ss:$8 sps:$4 sm:$0xff]   ;;  %v1122_v11 = vld [vmem:[#allocation7 + $0x48] sm:$0xff]   ;;  %vm399_vm0 = vcmask 523264   ;;  %v1343_v27 = vmov 0.0  }
  0x91   : > { %v1121_v9 = vld [vmem:[#allocation7] sm:$0xff]   ;;  %969 = vmatprep.subr.bf16.mxu1 %v1120_v8  ;;  %v1123_v12 = vld [vmem:[#allocation7 + $0x8] sm:$0xff]   ;;  %v1119_v14 = vld [vmem:[%s1594_s1] sm:$0xff]   ;;  %v1344_v32 = vmov 1966171168   ;;  %v462_v36 = vshrl.u32 %v461_v34, 7 }
  0x92   : > { %970 = vmatpush3.bf16.msra.mxu1 %v1121_v9  ;;  %v1125_v15 = vld [vmem:[#allocation7 + $0x10] sm:$0xff]   ;;  %v1126_v16 = vld [vmem:[#allocation7 + $0x58] sm:$0xff]   ;;  %v1128_v18 = vld [vmem:[#allocation7 + $0x60] sm:$0xff]   ;;  %v459_v33 = vunpack.c.l.s4 %v1344_v32  ;;  %vm1345_vm1 = vmmov 0   ;;  %s340_s8 = scalar_lea.vmem [#allocation10], %s920_s21  ;;  %s968_s16 = sshll.u32 %s1410_s28, 7 }
  0x93   : > { %406 = vmatpush1.bf16.msra.mxu0 %v1112_v4  ;;  %971 = vmatprep.subr.bf16.mxu1 %v1122_v11  ;;  %v1127_v17 = vld [vmem:[#allocation7 + $0x18] sm:$0xff]   ;;  %v1129_v19 = vld [vmem:[#allocation7 + $0x20] sm:$0xff]   ;;  %v1130_v20 = vld [vmem:[#allocation7 + $0x68] sm:$0xff]   ;;  %v477_v43 = vsub.s32 0, %v462_v36  ;;  %s808_s23 = sshll.u32 %s340_s8, 4  ;;  %s1630_s19 = scalar_lea.hbm %s1681_s7, %s968_s16  ;;  %s1625_s23 = int_to_ptr.vmem [resolvable:$true] %s808_s23 }
  0x94   : > { %407 = vmatprep.subr.bf16.mxu0 %v1113_v5  ;;  %v1131_v21 = vld [vmem:[#allocation7 + $0x28] sm:$0xff]   ;;  %v1132_v22 = vld [vmem:[#allocation7 + $0x70] sm:$0xff]   ;;  %v1134_v24 = vld [vmem:[#allocation7 + $0x78] sm:$0xff]   ;;  %v460_v35 = vunpack.c.0.s8 %v459_v33  ;;  %s795_s21 = scalar_lea.sflag [#allocation4], %s1588_s20  ;;  %s1258_s22 = scalar_lea.vmem %s1625_s23, 128 }
  0x95   : > { %v1133_v23 = vld [vmem:[#allocation7 + $0x30] sm:$0xff]   ;;  %v1135_v25 = vld [vmem:[#allocation7 + $0x38] sm:$0xff]   ;;  %v1136_v26 = vld [vmem:[#allocation8] sm:$0xff]   ;;  %p1259_p10 = scmp.ne.s32.totalorder %s1625_s23, %s1258_s22  ;;  %s1346_s28 = smov [#allocation10]  }
  0x96   : > { %972 = vmatpush3.bf16.msra.mxu1 %v1123_v12  ;;  %v1137_v28 = vld [vmem:[#allocation8 + $0x8] sm:$0xff]   ;;  %v1138_v29 = vld [vmem:[#allocation8 + $0x10] sm:$0xff]   ;;  %v1139_v30 = vld [vmem:[#allocation8 + $0x18] sm:$0xff]   ;;  %v463_v38 = vsub.s32 %v460_v35, %v462_v36  ;;  %s1262_s1 = sshll.u32 %s1346_s28, 4  ;;  %s1263_s1 = int_to_ptr.vmem [resolvable:$false] %s1262_s1 }
  0x97   : > { %408 = vmatpush1.bf16.msra.mxu0 %v1115_v6  ;;  %973 = vmatprep.subr.bf16.mxu1 %v1124_v13  ;;  %v1140_v31 = vld [vmem:[#allocation8 + $0x20] sm:$0xff]   ;;  %v935_v37 = vld.sshfl [vmem:[%s1676_s2] sm:$0x11 pattern:$0x75316420]  ;;  %v1141_v57 = vld [vmem:[#allocation8 + $0x28] sm:$0xff]   ;;  %p1260_p3 = pnand %p1259_p10, %p1537_p5  ;;  %p1265_p12 = scmp.lt.s32.totalorder %s1625_s23, %s1263_s1 }
  0x98   : > { %409 = vmatprep.subr.bf16.mxu0 %v1116_v7  ;;  %v457_v39 = vcombine.high %v935_v37, %v935_v37  ;;  %v464_v40 = vrot.slane %v935_v37, %v463_v38  ;;  %v1142_v58 = vld [vmem:[#allocation8 + $0x30] sm:$0xff]   ;;  %v1143_v59 = vld [vmem:[#allocation8 + $0x38] sm:$0xff]   ;;  %s1264_s30 = scalar_lea.vmem %s1263_s1, 256 }
  0x99   : > { %v660_v60 = vld [vmem:[%s1678_s4] sm:$0x1]  ;;  %p1261_p7 = pneg %p1260_p3  ;;  %p1266_p2 = scmp.lt.s32.totalorder %s1264_s30, %s1258_s22 }
  0x9a   : > { %974 = vmatpush3.bf16.msra.mxu1 %v1125_v15  ;;  %v471_v41 = vrot.slane %v457_v39, %v463_v38  ;;  %v473_v42 = vpack.i.b16 %v464_v40, %v464_v40  ;;  %v662_v62 = vpack.i.b16 %v660_v60, %v660_v60  ;;  %v776_v9 = vld [vmem:[%s1680_s6] sm:$0x1] }
  0x9b   : > { %410 = vmatpush1.bf16.msra.mxu0 %v1118_v10  ;;  %975 = vmatprep.subr.bf16.mxu1 %v1126_v16  ;;  %v778_v10 = vpack.i.b16 %v776_v9, %v776_v9  ;;  %p1267_p1 = por %p1266_p2, %p1265_p12 }
  0x9c   : > { %1000 = vmatprep.subr.bf16.mxu0 %v1343_v27  ;;  %v480_v44 = vpack.i.b16 %v471_v41, %v471_v41  ;;  %v478_v47 = vrot.slane %v473_v42, %v477_v43  ;;  %v667_v5 = vrot.slane %v662_v62, %v477_v43 }
  0x9d   : > { %v783_v13 = vrot.slane %v778_v10, %v477_v43  ;;  %p1268_p4 = pnand %p1267_p1, %p1261_p7 }
  0x9e   : > { %934 = vmatmul.mubr.msk.bf16.vlgmr.msra.gmra.mrb[0].mxu0 %vm399_vm0, %v1119_v14  ;;  %976 = vmatpush3.bf16.msra.mxu1 %v1127_v17  ;;  %v485_v49 = vrot.slane %v480_v44, %v477_v43 }
  0x9f   : > { %977 = vmatprep.subr.bf16.mxu1 %v1128_v18  ;;  %1001 = vmatpush3.bf16.msra.mxu0 %v1136_v26 }
  0xa0   : > { %1002 = vmatprep.subr.bf16.mxu0 %v1343_v27  ;;  %1016 = vmatprep.mubr.msk.bf16.mxu0 %vm1345_vm1, %v1343_v27 }
  0xa2   : > { %978 = vmatpush3.bf16.msra.mxu1 %v1129_v19 }
  0xa3   : > { %979 = vmatprep.subr.bf16.mxu1 %v1130_v20  ;;  %1003 = vmatpush3.bf16.msra.mxu0 %v1137_v28 }
  0xa4   : > { %1004 = vmatprep.subr.bf16.mxu0 %v1343_v27 }
  0xa6   : > { %980 = vmatpush3.bf16.msra.mxu1 %v1131_v21 }
  0xa7   : > { %981 = vmatprep.subr.bf16.mxu1 %v1132_v22  ;;  %1005 = vmatpush3.bf16.msra.mxu0 %v1138_v29 }
  0xa8   : > { %1006 = vmatprep.subr.bf16.mxu0 %v1343_v27 }
  0xaa   : > { %982 = vmatpush3.bf16.msra.mxu1 %v1133_v23 }
  0xab   : > { %983 = vmatprep.subr.bf16.mxu1 %v1134_v24  ;;  %1007 = vmatpush3.bf16.msra.mxu0 %v1139_v30 }
  0xac   : > { %1008 = vmatprep.subr.bf16.mxu0 %v1343_v27 }
  0xae   : > { %984 = vmatpush3.bf16.msra.mxu1 %v1135_v25 }
  0xaf   : > { %1009 = vmatpush3.bf16.msra.mxu0 %v1140_v31 }
  0xb0   : > { %1010 = vmatprep.subr.bf16.mxu0 %v1343_v27 }
  0xb3   : > { %1011 = vmatpush3.bf16.msra.mxu0 %v1141_v57 }
  0xb4   : > { %1012 = vmatprep.subr.bf16.mxu0 %v1343_v27 }
  0xb7   : > { %1013 = vmatpush3.bf16.msra.mxu0 %v1142_v58 }
  0xb8   : > { %1014 = vmatprep.subr.bf16.mxu0 %v1343_v27 }
  0xbb   : > { %1015 = vmatpush3.bf16.msra.mxu0 %v1143_v59 }
 0x171   : > { %v437_v45 = vpop.f32.mrb[0].mxu0 }
 0x172   : > { %v439_v46 = vpop.f32.mrb[1].mxu0 }
 0x173   : > { %v441_v48 = vpop.f32.mrb[2].mxu0 }
 0x174   : > { %v446_v50 = vpack.c.bf16 %v441_v48, %v437_v45  ;;  %v443_v51 = vpop.f32.mrb[3].mxu0 }
 0x175   : > { %v447_v52 = vpack.c.bf16 %v443_v51, %v439_v46 }
 0x176   : > { %v486_v53 = vadd.bf16 %v478_v47, %v446_v50 }
 0x177   : > { %v487_v54 = vadd.bf16 %v485_v49, %v447_v52 }
 0x178   : > { %v488_v56 = vmax.bf16 %v1342_v0, %v486_v53 }
 0x179   : > { %v489_v55 = vmax.bf16 %v1342_v0, %v487_v54 }
 0x17b   : > { %650 = vmatprep.mubr.bf16.mxu1 %v489_v55 }
 0x17c   : > { %651 = vmatmul.mubr.bf16.vlgmr.msra.gmra.mrb[0].mxu1 %v488_v56 }
 0x24f   : > { %v985_v61 = vpop.f32.mrb[0].mxu1 }
 0x250   : > { %v986_v63 = vpop.f32.mrb[1].mxu1 }
 0x251   : > { %v987_v1 = vadd.f32 %v986_v63, %v985_v61  ;;  %v988_v2 = vpop.f32.mrb[2].mxu1 }
 0x252   : > { %v989_v3 = vpop.f32.mrb[3].mxu1 }
 0x253   : > { %v990_v4 = vadd.f32 %v989_v3, %v988_v2 }
 0x255   : > { %v659_v6 = vpack.c.bf16 %v990_v4, %v987_v1 }
 0x257   : > { %v668_v7 = vadd.bf16 %v667_v5, %v659_v6 }
 0x259   : > { %v669_v8 = vmax.bf16 %v1342_v0, %v668_v7 }
 0x25b   : > { %1017 = vmatmul.mubr.bf16.vlgmr.msra.gmra.mrb[4].mxu0 %v669_v8 }
 0x32e   : > { %v768_v11 = vpop.f32.mrb[4].mxu0 }
 0x32f   : > { %v1018_v12 = vpop.f32.mrb[5].mxu0 }
 0x330   : > { %v771_v14 = vpop.f32.mrb[6].mxu0 }
 0x331   : > { %v775_v15 = vpack.c.bf16 %v771_v14, %v768_v11  ;;  %v1019_v16 = vpop.f32.mrb[7].mxu0 }
 0x333   : > { %v784_v17 = vadd.bf16 %v783_v13, %v775_v15 }
 0x335   : > { %v960_v0 = vcombine.low %v784_v17, %v784_v17  ;;  %v961_v18 = vcombine.high %v784_v17, %v784_v17 }
 0x337   : > { %792 = vst [vmem:[%s340_s8] sm:$0xf] %v960_v0  ;;  %793 = vst [vmem:[%s340_s8 + $0x4] sm:$0xf] %v961_v18 }
 0x338   : > { %1271 = shalt.err (!%p1268_p4)
}
 0x339   : > { %s1272_s9 = scalar_lea.hbm %s1630_s19, 128  ;;  %s1276_s17 = scalar_lea.hbm %s1681_s7, 256 }
 0x33a   : > { %p1273_p9 = scmp.ne.s32.totalorder %s1630_s19, %s1272_s9  ;;  %p1277_p8 = scmp.lt.u32.totalorder %s1630_s19, %s1681_s7 }
 0x33b   : > { %p1278_p13 = scmp.lt.u32.totalorder %s1276_s17, %s1272_s9  ;;  %p1280_p10 = scmp.lt.u32.totalorder %s1272_s9, %s1630_s19 }
 0x33c   : > { %p1274_p0 = pnand %p1273_p9, %p1537_p5 }
 0x33d   : > { %p1279_p6 = por %p1278_p13, %p1277_p8 }
 0x33e   : > { %p1275_p11 = pneg %p1274_p0 }
 0x33f   : > { %p1281_p3 = por %p1280_p10, %p1279_p6 }
 0x341   : > { %p1282_p7 = pnand %p1281_p3, %p1275_p11 }
 0x343   : > { %1285 = shalt.err (!%p1282_p7)
}
 0x344   : > { %s1347_s16 = smov 64   ;;  %s1348_s11 = smov 4  }
 0x345   : > { %1034 = dma.vmem_to_hbm [thread:$0]  (%p1537_p5), %s1625_s23, 128, %s1630_s19, %s795_s21, %s1347_s16, %s1347_s16, %s1348_s11  }
 0x346 PF: > { %s1703_s12 = sld [smem:[#allocation15_spill]]  ;;  %s823_s22 = sand.u32 1, %s1320_s24  }
 0x347   : > { %p1705_p2 = scmp.ge.s32.totalorder %s1332_s27, 2  ;;  %s824_s28 = scalar_lea.sflag [#allocation4], %s823_s22 }
 0x34c   : > { %p1704_p12 = scmp.ne.s32.totalorder %s1703_s12, 0 }
 0x34e   : > { %p1051_p1 = pnand %p1705_p2, %p1704_p12 }
 0x350   : > { %1315 = dma.done.wait (!%p1051_p1), %s824_s28, 128  }
 0x351   : > { %1317 = vsyncadd (!%p1051_p1), %s824_s28, 4294967168  ;;  %p22_p4 = scmp.ge.s32.totalorder %s1502_s18, 4   ;;  %s1706_s24 = smov %s1324_s25 }
 0x352   : > { %s1707_s25 = smov %s1328_s26  ;;  %s1708_s26 = smov %s1533_s13 }
 0x353   : > { %s1709_s27 = smov %s1502_s18  ;;  %24 = sbr.rel (!%p22_p4) target bundleno = 9 (0x9), region = 105 }
 0x35a   :  { %829 = vsyncpa [#allocation3], 1 }
 0x35b   :  { %831 = vsyncpa [#allocation3 + $0x1], 1 }
 0x35c   :  { %832 = vsyncpa [#allocation6], 1 }
 0x35d   :  { %833 = vsyncpa [#allocation9], 1 }
 0x35e   :  { %834 = vsyncpa [#allocation4], 1 }
 0x35f   :  { %836 = vsyncpa [#allocation4 + $0x1], 1 }

</bundles_post_ra>
